<compile_context>
chip_gen: v7x
topology: tpu7x:2x2x1
jax: 0.10.0
libtpu: 0.0.40
codegen_flags: <defaults>
</compile_context>

<pallas_src>
import jax
import jax.numpy as jnp
import numpy as np
from jax.experimental import pallas as pl
from jax.experimental.pallas import tpu as pltpu

B, S, K, H, V = 2, 16, 8, 32, 128   # batch, seq, #selected tokens, hidden, vocab
R = 2 * B * K                       # fused rows: [0, B*K) = 'more', [B*K, 2*B*K) = 'less'


def _pertnorm_kernel(wid_ref, tid_ref, mask_ref, wemb_ref, temb_ref,
                     w_ref, b_ref, loss_ref):
    """Embedding gather (MXU) -> LM head (MXU) -> mask -> log_softmax -> KL."""
    # In-kernel word-embedding gather for the selected tokens:
    # one-hot(R, V) @ word_emb(V, H) on the MXU, bf16 operands, f32 acc.
    lane = jax.lax.broadcasted_iota(jnp.int32, (R, V), 1)
    onehot = (lane == wid_ref[...]).astype(jnp.bfloat16)            # (R, V), exact in bf16
    h = jnp.dot(onehot, wemb_ref[...],
                preferred_element_type=jnp.float32)                 # (R, H) f32

    # Token-type embedding: only 2 types -> exact 0/1 arithmetic select (f32).
    tt = tid_ref[...].astype(jnp.float32)                           # (R, 1)
    h = h + (1.0 - tt) * temb_ref[0:1, :] + tt * temb_ref[1:2, :]   # (R, H) f32

    # LM head for both sentences of the whole batch in one MXU push:
    # (R, H) @ (H, V), bf16 operands, f32 accumulation.
    logits = jnp.dot(h.astype(jnp.bfloat16), w_ref[...],
                     preferred_element_type=jnp.float32)            # (R, V)
    # Bias + fused attention*selection row mask (multiplicative zero-masking,
    # matching the reference module: masked rows become uniform distributions).
    logits = (logits + b_ref[...]) * mask_ref[...]

    # f32 log_softmax + KL (keep off bf16: v5e has no bf16 VPU/EUP path and the
    # rtol=1e-3 / atol=1e-4 check is against an f32 reference).
    lp = jax.nn.log_softmax(logits, axis=-1)                        # (R, V)
    half = R // 2
    more_lp = lp[:half]                                             # (B*K, V)
    less_lp = lp[half:]                                             # (B*K, V)

    # F.kl_div(less_lp, more_lp, log_target=True, reduction='batchmean')
    #   = sum( exp(more_lp) * (more_lp - less_lp) ) / B
    # ('batchmean' divides by the leading dim of the (B, K, V) input, i.e. B).
    kl = jnp.sum(jnp.exp(more_lp) * (more_lp - less_lp))
    loss_ref[0, 0] = kl * (1.0 / B)                                 # direct SMEM scalar store


def perturbation_loss(word_ids, type_ids, row_mask, word_emb_bf16, type_emb,
                      lm_w_bf16, lm_b):
    vmem = pltpu.MemorySpace.VMEM
    smem = pltpu.MemorySpace.SMEM
    loss = pl.pallas_call(
        _pertnorm_kernel,
        out_shape=jax.ShapeDtypeStruct((1, 1), jnp.float32),
        in_specs=[pl.BlockSpec(memory_space=vmem),   # word_ids (R, 1) int32
                  pl.BlockSpec(memory_space=vmem),   # type_ids (R, 1) int32
                  pl.BlockSpec(memory_space=vmem),   # row_mask (R, 1) f32
                  pl.BlockSpec(memory_space=vmem),   # word_emb (V, H) bf16
                  pl.BlockSpec(memory_space=vmem),   # type_emb (2, H) f32
                  pl.BlockSpec(memory_space=vmem),   # lm_w     (H, V) bf16
                  pl.BlockSpec(memory_space=vmem)],  # lm_b     (1, V) f32
        out_specs=pl.BlockSpec(memory_space=smem),   # scalar loss in SMEM
    )(word_ids, type_ids, row_mask, word_emb_bf16, type_emb, lm_w_bf16, lm_b)
    return loss[0, 0]


def make_params(key):
    k1, k2, k3, k4 = jax.random.split(key, 4)
    word_emb = jax.random.normal(k1, (V, H), jnp.float32) * 0.02
    type_emb = jax.random.normal(k2, (2, H), jnp.float32) * 0.02
    lm_w = jax.random.normal(k3, (H, V), jnp.float32) * 0.02
    lm_b = jax.random.normal(k4, (1, V), jnp.float32) * 0.02
    return word_emb, type_emb, lm_w, lm_b


def sentence_perturbation_normalizer(params,
                                     more_input_ids, more_token_type_ids,
                                     more_attention_mask, more_indices, more_mask,
                                     less_input_ids, less_token_type_ids,
                                     less_attention_mask, less_indices, less_mask):
    # TODO(synk): the real pre-trained transformer encoder is out of scope; the
    # wrapped model is a deterministic embedding + linear LM head, and its full
    # float path (embedding gather -> LM head -> softmax -> KL) runs in-kernel.
    word_emb, type_emb, lm_w, lm_b = params

    # Wrapper only prepares tiny int metadata (B*K values per tensor): the word
    # id, token-type id and fused attention*selection mask at each selected
    # position.  No float activations round-trip through HBM.
    def select_meta(ids, tt, attn, idx, msk):
        w = jnp.take_along_axis(ids, idx, axis=1)      # (B, K) selected word ids
        t = jnp.take_along_axis(tt, idx, axis=1)       # (B, K) selected type ids
        a = jnp.take_along_axis(attn, idx, axis=1)     # (B, K) attention @ selected
        return (w.reshape(B * K, 1), t.reshape(B * K, 1),
                (a * msk).reshape(B * K, 1))

    mw, mt, mm = select_meta(more_input_ids, more_token_type_ids,
                             more_attention_mask, more_indices, more_mask)
    lw, lt, lmsk = select_meta(less_input_ids, less_token_type_ids,
                               less_attention_mask, less_indices, less_mask)

    word_ids_all = jnp.concatenate([mw, lw], axis=0)     # (R, 1) int32
    type_ids_all = jnp.concatenate([mt, lt], axis=0)     # (R, 1) int32
    mask_all = jnp.concatenate([mm, lmsk], axis=0)       # (R, 1) f32

    # bf16 matmul operands (native MXU path, half the weight DMA bytes);
    # accumulation and everything after the matmuls stays f32.
    loss = perturbation_loss(word_ids_all, type_ids_all, mask_all,
                             word_emb.astype(jnp.bfloat16),
                             type_emb,
                             lm_w.astype(jnp.bfloat16),
                             lm_b)
    return (loss,)


def reference_loss(params,
                   more_ids, more_tt, more_attn, more_idx, more_msk,
                   less_ids, less_tt, less_attn, less_idx, less_msk):
    word_emb, type_emb, lm_w, lm_b = params

    def model_logits(ids, tt):
        h = word_emb[ids] + type_emb[tt]
        return jnp.einsum('bsh,hv->bsv', h, lm_w) + lm_b[0]

    def masked_lp(ids, tt, attn, idx, msk):
        logits = model_logits(ids, tt) * attn[:, :, None]
        logits = jnp.take_along_axis(logits, idx[:, :, None], axis=1)
        logits = logits * msk[:, :, None]
        return jax.nn.log_softmax(logits, axis=-1)

    more_lp = masked_lp(more_ids, more_tt, more_attn, more_idx, more_msk)
    less_lp = masked_lp(less_ids, less_tt, less_attn, less_idx, less_msk)
    return jnp.sum(jnp.exp(more_lp) * (more_lp - less_lp)) / B


if __name__ == "__main__":
    key = jax.random.PRNGKey(0)
    kp, *ks = jax.random.split(key, 11)
    params = make_params(kp)

    more_input_ids = jax.random.randint(ks[0], (B, S), 0, V, dtype=jnp.int32)
    less_input_ids = jax.random.randint(ks[1], (B, S), 0, V, dtype=jnp.int32)
    more_token_type_ids = jax.random.randint(ks[2], (B, S), 0, 2, dtype=jnp.int32)
    less_token_type_ids = jax.random.randint(ks[3], (B, S), 0, 2, dtype=jnp.int32)
    more_attention_mask = (jax.random.uniform(ks[4], (B, S)) > 0.2).astype(jnp.float32)
    less_attention_mask = (jax.random.uniform(ks[5], (B, S)) > 0.2).astype(jnp.float32)
    more_indices = jax.random.randint(ks[6], (B, K), 0, S, dtype=jnp.int32)
    less_indices = jax.random.randint(ks[7], (B, K), 0, S, dtype=jnp.int32)
    more_mask = (jax.random.uniform(ks[8], (B, K)) > 0.3).astype(jnp.float32)
    less_mask = (jax.random.uniform(ks[9], (B, K)) > 0.3).astype(jnp.float32)

    args = (more_input_ids, more_token_type_ids, more_attention_mask,
            more_indices, more_mask,
            less_input_ids, less_token_type_ids, less_attention_mask,
            less_indices, less_mask)

    (loss,) = sentence_perturbation_normalizer(params, *args)
    loss = jax.block_until_ready(loss)

    ref = jax.block_until_ready(reference_loss(params, *args))
    np.testing.assert_allclose(np.asarray(loss), np.asarray(ref),
                               rtol=1e-3, atol=1e-4)
    print("KERNEL_OK")
</pallas_src>

<mosaic_0001>
module attributes {stable_mosaic.version = 11 : i64} {
  func.func @_pertnorm_kernel(%arg0: memref<32x1xi32, #tpu.memory_space<vmem>>, %arg1: memref<32x1xi32, #tpu.memory_space<vmem>>, %arg2: memref<32x1xf32, #tpu.memory_space<vmem>>, %arg3: memref<128x32xbf16, #tpu.memory_space<vmem>>, %arg4: memref<2x32xf32, #tpu.memory_space<vmem>>, %arg5: memref<32x128xbf16, #tpu.memory_space<vmem>>, %arg6: memref<1x128xf32, #tpu.memory_space<vmem>>, %arg7: memref<1x1xf32, #tpu.memory_space<smem>>) attributes {dimension_semantics = [], scalar_prefetch = 0 : i64, scratch_operands = 0 : i64, tpu.core_type = #tpu.core_type<tc>} {
    %0 = tpu.iota {dimensions = array<i32: 1>} : vector<32x128xi32>
    %c0 = arith.constant 0 : index
    %c0_0 = arith.constant 0 : index
    %1 = vector.load %arg0[%c0, %c0_0] : memref<32x1xi32, #tpu.memory_space<vmem>>, vector<32x1xi32>
    %2 = vector.broadcast %1 : vector<32x1xi32> to vector<32x128xi32>
    %3 = arith.cmpi eq, %0, %2 : vector<32x128xi32>
    %4 = arith.extui %3 : vector<32x128xi1> to vector<32x128xi32>
    %5 = arith.sitofp %4 : vector<32x128xi32> to vector<32x128xf32>
    %6 = arith.truncf %5 : vector<32x128xf32> to vector<32x128xbf16>
    %c0_1 = arith.constant 0 : index
    %c0_2 = arith.constant 0 : index
    %7 = vector.load %arg3[%c0_1, %c0_2] : memref<128x32xbf16, #tpu.memory_space<vmem>>, vector<128x32xbf16>
    %cst = arith.constant dense<0.000000e+00> : vector<32x32xf32>
    %8 = tpu.matmul %6, %7, %cst {dimension_numbers = #tpu.dot_dimension_numbers<[1], [0], [0], [1], [0, 0, 1, 1], [], []>} : vector<32x128xbf16>, vector<128x32xbf16>, vector<32x32xf32> -> vector<32x32xf32>
    %c0_3 = arith.constant 0 : index
    %c0_4 = arith.constant 0 : index
    %9 = vector.load %arg1[%c0_3, %c0_4] : memref<32x1xi32, #tpu.memory_space<vmem>>, vector<32x1xi32>
    %10 = arith.sitofp %9 : vector<32x1xi32> to vector<32x1xf32>
    %cst_5 = arith.constant 1.000000e+00 : f32
    %11 = vector.broadcast %cst_5 : f32 to vector<32x1xf32>
    %12 = arith.subf %11, %10 : vector<32x1xf32>
    %c0_6 = arith.constant 0 : index
    %c0_7 = arith.constant 0 : index
    %13 = vector.load %arg4[%c0_6, %c0_7] : memref<2x32xf32, #tpu.memory_space<vmem>>, vector<1x32xf32>
    %14 = vector.broadcast %12 : vector<32x1xf32> to vector<32x32xf32>
    %15 = vector.broadcast %13 : vector<1x32xf32> to vector<32x32xf32>
    %16 = arith.mulf %14, %15 : vector<32x32xf32>
    %17 = arith.addf %8, %16 : vector<32x32xf32>
    %c1 = arith.constant 1 : index
    %c0_8 = arith.constant 0 : index
    %18 = vector.load %arg4[%c1, %c0_8] : memref<2x32xf32, #tpu.memory_space<vmem>>, vector<1x32xf32>
    %19 = vector.broadcast %10 : vector<32x1xf32> to vector<32x32xf32>
    %20 = vector.broadcast %18 : vector<1x32xf32> to vector<32x32xf32>
    %21 = arith.mulf %19, %20 : vector<32x32xf32>
    %22 = arith.addf %17, %21 : vector<32x32xf32>
    %23 = arith.truncf %22 : vector<32x32xf32> to vector<32x32xbf16>
    %c0_9 = arith.constant 0 : index
    %c0_10 = arith.constant 0 : index
    %24 = vector.load %arg5[%c0_9, %c0_10] : memref<32x128xbf16, #tpu.memory_space<vmem>>, vector<32x128xbf16>
    %cst_11 = arith.constant dense<0.000000e+00> : vector<32x128xf32>
    %25 = tpu.matmul %23, %24, %cst_11 {dimension_numbers = #tpu.dot_dimension_numbers<[1], [0], [0], [1], [0, 0, 1, 1], [], []>} : vector<32x32xbf16>, vector<32x128xbf16>, vector<32x128xf32> -> vector<32x128xf32>
    %c0_12 = arith.constant 0 : index
    %c0_13 = arith.constant 0 : index
    %26 = vector.load %arg6[%c0_12, %c0_13] : memref<1x128xf32, #tpu.memory_space<vmem>>, vector<1x128xf32>
    %27 = vector.broadcast %26 : vector<1x128xf32> to vector<32x128xf32>
    %28 = arith.addf %25, %27 : vector<32x128xf32>
    %c0_14 = arith.constant 0 : index
    %c0_15 = arith.constant 0 : index
    %29 = vector.load %arg2[%c0_14, %c0_15] : memref<32x1xf32, #tpu.memory_space<vmem>>, vector<32x1xf32>
    %30 = vector.broadcast %29 : vector<32x1xf32> to vector<32x128xf32>
    %31 = arith.mulf %28, %30 : vector<32x128xf32>
    %cst_16 = arith.constant dense<0xFF800000> : vector<32xf32>
    %32 = vector.multi_reduction <maximumf>, %31, %cst_16 [1] : vector<32x128xf32> to vector<32xf32>
    %cst_17 = arith.constant 0xFF800000 : f32
    %33 = vector.broadcast %cst_17 : f32 to vector<32xf32>
    %34 = arith.maximumf %33, %32 : vector<32xf32>
    %35 = vector.shape_cast %34 : vector<32xf32> to vector<32x1xf32>
    %36 = vector.broadcast %35 : vector<32x1xf32> to vector<32x128xf32>
    %37 = arith.subf %31, %36 : vector<32x128xf32>
    %38 = math.exp %37 : vector<32x128xf32>
    %cst_18 = arith.constant dense<0.000000e+00> : vector<32xf32>
    %39 = vector.multi_reduction <add>, %38, %cst_18 [1] : vector<32x128xf32> to vector<32xf32>
    %40 = vector.shape_cast %39 : vector<32xf32> to vector<32x1xf32>
    %41 = math.log %40 : vector<32x1xf32>
    %42 = vector.broadcast %41 : vector<32x1xf32> to vector<32x128xf32>
    %43 = arith.subf %37, %42 : vector<32x128xf32>
    %44 = vector.extract_strided_slice %43 {offsets = [0, 0], sizes = [16, 128], strides = [1, 1]} : vector<32x128xf32> to vector<16x128xf32>
    %45 = vector.extract_strided_slice %43 {offsets = [16, 0], sizes = [16, 128], strides = [1, 1]} : vector<32x128xf32> to vector<16x128xf32>
    %46 = math.exp %44 : vector<16x128xf32>
    %47 = arith.subf %44, %45 : vector<16x128xf32>
    %48 = arith.mulf %46, %47 : vector<16x128xf32>
    %49 = vector.shape_cast %48 : vector<16x128xf32> to vector<1x16x128xf32>
    %cst_19 = arith.constant dense<0.000000e+00> : vector<1xf32>
    %50 = vector.multi_reduction <add>, %49, %cst_19 [1, 2] : vector<1x16x128xf32> to vector<1xf32>
    %51 = vector.shape_cast %50 : vector<1xf32> to vector<1x1x1xf32>
    %52 = vector.extract %51[0, 0, 0] : f32 from vector<1x1x1xf32>
    %cst_20 = arith.constant 5.000000e-01 : f32
    %53 = arith.mulf %52, %cst_20 : f32
    %c0_21 = arith.constant 0 : index
    %c0_22 = arith.constant 0 : index
    %54 = memref.load %arg7[%c0_21, %c0_22] : memref<1x1xf32, #tpu.memory_space<smem>>
    memref.store %53, %arg7[%c0_21, %c0_22] : memref<1x1xf32, #tpu.memory_space<smem>>
    return
  }
}

</mosaic_0001>

<bundles_post_ra>
// kernel: tpu_custom_call.1
= control target key start
LH: loop header
LB: loop body
LE: loop exit
PB: predicated region body
PF: predicated region fallthrough
CT: control target
= control target key end

     0   :  { %v544_v2 = vmov 0   ;;  %s674_s0 = inlined_call_operand.vmem [shape: s32[32,1], index: 0, kind: input, shape index: {}]   ;;  %s675_s1 = inlined_call_operand.vmem [shape: s32[32,1], index: 1, kind: input, shape index: {}]   ;;  %s676_s2 = inlined_call_operand.vmem [shape: f32[32,1], index: 2, kind: input, shape index: {}]   ;;  %s677_s3 = inlined_call_operand.vmem [shape: bf16[128,32], index: 3, kind: input, shape index: {}]   ;;  %s678_s4 = inlined_call_operand.vmem [shape: f32[2,32], index: 4, kind: input, shape index: {}]   ;;  %s679_s5 = inlined_call_operand.vmem [shape: bf16[32,128], index: 5, kind: input, shape index: {}]   ;;  %s680_s6 = inlined_call_operand.vmem [shape: f32[1,128], index: 6, kind: input, shape index: {}]   ;;  %s681_s7 = inlined_call_operand.hbm [shape: f32[1,1], index: 7, kind: output, shape index: {}]  }
   0x1   :  { %v32_v0 = vld [vmem:[%s674_s0 + $0x10] sm:$0xff]  ;;  %v30_v1 = vld [vmem:[%s674_s0] sm:$0xff]  ;;  %501 = vset.pattern.permute.xlu1 %v544_v2  ;;  %500 = vset.pattern.permute.xlu0 %v544_v2  ;;  %v77_v3 = vld [vmem:[%s675_s1 + $0x8] sm:$0xff] }
   0x2   :  { %v76_v4 = vld [vmem:[%s675_s1] sm:$0xff]  ;;  %41 = vperm.xlu1 %501, %v32_v0   ;;  %35 = vperm.xlu0 %500, %v30_v1   ;;  %v33_v5 = vld [vmem:[%s674_s0 + $0x18] sm:$0xff]  ;;  %v81_v6 = vcvt.s32.f32 %v77_v3  ;;  %v31_v8 = vld [vmem:[%s674_s0 + $0x8] sm:$0xff] }
   0x3   :  { %v80_v7 = vcvt.s32.f32 %v76_v4  ;;  %v79_v9 = vld [vmem:[%s675_s1 + $0x18] sm:$0xff]  ;;  %v78_v10 = vld [vmem:[%s675_s1 + $0x10] sm:$0xff]  ;;  %v502_v13 = vld [vmem:[%s677_s3] sm:$0xff]  }
   0x4   :  { %v85_v11 = vsub.f32 1.0, %v81_v6  ;;  %v503_v14 = vld [vmem:[%s677_s3 + $0x8] sm:$0xff]   ;;  %v83_v15 = vcvt.s32.f32 %v79_v9  ;;  %v82_v16 = vcvt.s32.f32 %v78_v10  ;;  %467 = vmatprep.subr.bf16.mxu0 %v502_v13  ;;  %v504_v17 = vld [vmem:[%s677_s3 + $0x10] sm:$0xff]   ;;  %v505_v20 = vld [vmem:[%s677_s3 + $0x18] sm:$0xff]  }
   0x5   :  { %v84_v12 = vsub.f32 1.0, %v80_v7  ;;  %468 = vmatpush3.bf16.msra.mxu0 %v502_v13 }
   0x6   :  { %44 = vperm.xlu1 %501, %v33_v5   ;;  %38 = vperm.xlu0 %500, %v31_v8   ;;  %v87_v18 = vsub.f32 1.0, %v83_v15  ;;  %v86_v19 = vsub.f32 1.0, %v82_v16 }
   0x7   :  { %469 = vmatprep.subr.bf16.mxu0 %v503_v14 }
   0x9   :  { %470 = vmatpush3.bf16.msra.mxu0 %v503_v14 }
   0xa   :  { %96 = vperm.xlu1 %501, %v85_v11   ;;  %91 = vperm.xlu0 %500, %v84_v12  }
   0xb   :  { %471 = vmatprep.subr.bf16.mxu0 %v504_v17 }
   0xe   :  { %106 = vperm.xlu1 %501, %v87_v18   ;;  %101 = vperm.xlu0 %500, %v86_v19  }
   0xf   :  { %12 = vsyncpa [#allocation3], 0  ;;  %472 = vmatpush3.bf16.msra.mxu0 %v504_v17  ;;  %v506_v21 = vld [vmem:[%s677_s3 + $0x20] sm:$0xff]   ;;  %v507_v22 = vld [vmem:[%s677_s3 + $0x28] sm:$0xff]   ;;  %v28_v29 = vlaneseq  ;;  %v545_v35 = vmov 1.0|1.0  }
  0x10   :  { %473 = vmatprep.subr.bf16.mxu0 %v505_v20  ;;  %v329_v23 = vld [vmem:[%s676_s2 + $0x8] sm:$0xff]  ;;  %v328_v24 = vld [vmem:[%s676_s2] sm:$0xff]  ;;  %v508_v25 = vld [vmem:[%s677_s3 + $0x30] sm:$0xff]   ;;  %vm272_vm6 = vcmask 261120   ;;  %s532_s23 = scalar_lea.hbm %s681_s7, 16 }
  0x11   :  { %v331_v26 = vld [vmem:[%s676_s2 + $0x18] sm:$0xff]  ;;  %v330_v27 = vld [vmem:[%s676_s2 + $0x10] sm:$0xff]  ;;  %v29_v32 = vand.u32 127, %v28_v29  ;;  %v510_v36 = vld [vmem:[%s679_s5] sm:$0xff]   ;;  %p533_p0 = scmp.ne.s32.totalorder %s681_s7, %s532_s23  ;;  %p536_p1 = scmp.lt.u32.totalorder %s532_s23, %s681_s7 }
  0x12   :  { %222 = vperm.xlu1 %501, %v81_v6   ;;  %217 = vperm.xlu0 %500, %v80_v7   ;;  %v509_v28 = vld [vmem:[%s677_s3 + $0x38] sm:$0xff]   ;;  %v511_v37 = vld [vmem:[%s679_s5 + $0x8] sm:$0xff]   ;;  %v434_v44 = vld [vmem:[%s678_s4] ss:$0 sm:$0xff] }
  0x13   :  { %474 = vmatpush3.bf16.msra.mxu0 %v505_v20  ;;  %487 = vmatprep.subr.bf16.mxu1 %v510_v36  ;;  %v447_v51 = vld [vmem:[%s678_s4 + $0x1] ss:$0 sm:$0xff]  ;;  %v448_v6 = vld [vmem:[%s680_s6] ss:$0 sm:$0xff]  ;;  %p538_p2 = pnand %p536_p1, %p533_p0 }
  0x14   :  { %475 = vmatprep.subr.bf16.mxu0 %v506_v21  ;;  %488 = vmatpush3.bf16.msra.mxu1 %v510_v36 }
  0x15   :  { %489 = vmatprep.subr.bf16.mxu1 %v511_v37 }
  0x16   :  { %232 = vperm.xlu1 %501, %v83_v15   ;;  %227 = vperm.xlu0 %500, %v82_v16  }
  0x17   :  { %476 = vmatpush3.bf16.msra.mxu0 %v506_v21 }
  0x18   :  { %477 = vmatprep.subr.bf16.mxu0 %v507_v22  ;;  %490 = vmatpush3.bf16.msra.mxu1 %v511_v37 }
  0x1a   :  { %339 = vperm.xlu1 %501, %v329_v23   ;;  %334 = vperm.xlu0 %500, %v328_v24  }
  0x1b   :  { %478 = vmatpush3.bf16.msra.mxu0 %v507_v22 }
  0x1c   :  { %479 = vmatprep.subr.bf16.mxu0 %v508_v25 }
  0x1e   :  { %349 = vperm.xlu1 %501, %v331_v26   ;;  %344 = vperm.xlu0 %500, %v330_v27  }
  0x1f   :  { %480 = vmatpush3.bf16.msra.mxu0 %v508_v25 }
  0x20   :  { %481 = vmatprep.subr.bf16.mxu0 %v509_v28 }
  0x23   :  { %482 = vmatpush3.bf16.msra.mxu0 %v509_v28 }
  0x81   :  { %v42_v30 = vpop.permute.xlu1 %41  ;;  %v36_v31 = vpop.permute.xlu0 %35 }
  0x82   :  { %vm48_vm0 = vcmp.eq.s32.totalorder %v29_v32, %v42_v30  ;;  %vm46_vm3 = vcmp.eq.s32.totalorder %v29_v32, %v36_v31 }
  0x85   :  { %v45_v33 = vpop.permute.xlu1 %44  ;;  %v39_v34 = vpop.permute.xlu0 %38 }
  0x86   :  { %vm49_vm1 = vcmp.eq.s32.totalorder %v29_v32, %v45_v33  ;;  %vm47_vm2 = vcmp.eq.s32.totalorder %v29_v32, %v39_v34 }
  0x87   :  { %vm445_vm4 = vmpackc.low %vm49_vm1, %vm48_vm0 }
  0x88   :  { %vm443_vm5 = vmpackc.low %vm47_vm2, %vm46_vm3 }
  0x89   :  { %483 = vmatprep.mubr.msk.bf16.mxu0 %vm443_vm5, %v545_v35  ;;  %v97_v38 = vpop.permute.xlu1 %96  ;;  %v92_v39 = vpop.permute.xlu0 %91 }
  0x8a   :  { %484 = vmatmul.mubr.msk.bf16.vlgmr.msra.gmra.mrb[0].mxu0 %vm445_vm4, %v545_v35  ;;  %v113_v47 = vmul.f32 %v434_v44, %v92_v39  ;;  %v114_v54 = vmul.f32 %v434_v44, %v97_v38 }
  0x8d   :  { %v107_v40 = vpop.permute.xlu1 %106  ;;  %v102_v41 = vpop.permute.xlu0 %101 }
  0x8e   :  { %v115_v45 = vmul.f32 %v434_v44, %v102_v41  ;;  %v116_v50 = vmul.f32 %v434_v44, %v107_v40 }
  0x91   :  { %v223_v42 = vpop.permute.xlu1 %222  ;;  %v218_v43 = vpop.permute.xlu0 %217 }
  0x92   :  { %v240_v61 = vmul.f32 %v447_v51, %v223_v42  ;;  %v239_v62 = vmul.f32 %v447_v51, %v218_v43 }
  0x95   :  { %v233_v46 = vpop.permute.xlu1 %232  ;;  %v228_v48 = vpop.permute.xlu0 %227 }
  0x96   :  { %v242_v57 = vmul.f32 %v447_v51, %v233_v46  ;;  %v241_v58 = vmul.f32 %v447_v51, %v228_v48 }
  0x99   :  { %v335_v8 = vpop.permute.xlu0 %334  ;;  %v340_v16 = vpop.permute.xlu1 %339 }
  0x9d   :  { %v345_v18 = vpop.permute.xlu0 %344  ;;  %v350_v21 = vpop.permute.xlu1 %349 }
 0x15d   :  { %v485_v49 = vpop.f32.mrb[0].mxu0 }
 0x15e   :  { %v208_v52 = vadd.f32 %v485_v49, %v115_v45  ;;  %v199_v53 = vpop.f32.mrb[1].mxu0 }
 0x15f   :  { %v200_v55 = vadd.f32 %v199_v53, %v113_v47  ;;  %v486_v56 = vpop.f32.mrb[2].mxu0 }
 0x160   :  { %v211_v59 = vadd.f32 %v486_v56, %v116_v50  ;;  %v202_v60 = vpop.f32.mrb[3].mxu0  ;;  %v245_v0 = vadd.f32 %v241_v58, %v208_v52 }
 0x161   :  { %v203_v63 = vadd.f32 %v202_v60, %v114_v54  ;;  %v243_v2 = vadd.f32 %v239_v62, %v200_v55 }
 0x162   :  { %v246_v1 = vadd.f32 %v242_v57, %v211_v59 }
 0x163   :  { %v244_v3 = vadd.f32 %v240_v61, %v203_v63 }
 0x164   :  { %v248_v4 = vpack.c.bf16 %v246_v1, %v245_v0 }
 0x165   :  { %v247_v5 = vpack.c.bf16 %v244_v3, %v243_v2 }
 0x167   :  { %491 = vmatprep.mubr.msk.bf16.mxu1 %vm272_vm6, %v247_v5 }
 0x168   :  { %492 = vmatmul.mubr.msk.bf16.vlgmr.msra.gmra.mrb[0].mxu1 %vm272_vm6, %v248_v4 }
 0x23b   :  { %v493_v7 = vpop.f32.mrb[0].mxu1 }
 0x23c   :  { %v313_v9 = vpop.f32.mrb[1].mxu1  ;;  %v322_v13 = vadd.f32 %v493_v7, %v448_v6 }
 0x23d   :  { %v314_v10 = vadd.f32 %v448_v6, %v313_v9  ;;  %v494_v11 = vpop.f32.mrb[2].mxu1 }
 0x23e   :  { %v316_v12 = vpop.f32.mrb[3].mxu1  ;;  %v325_v19 = vadd.f32 %v494_v11, %v448_v6  ;;  %v354_v20 = vmul.f32 %v345_v18, %v322_v13 }
 0x23f   :  { %v317_v14 = vadd.f32 %v448_v6, %v316_v12  ;;  %v352_v15 = vmul.f32 %v335_v8, %v314_v10 }
 0x240   :  { %v355_v22 = vmul.f32 %v350_v21, %v325_v19 }
 0x241   :  { %356 = vmax.xlane.f32.xlu0 %v352_v15  ;;  %v353_v17 = vmul.f32 %v340_v16, %v317_v14 }
 0x243   :  { %358 = vmax.xlane.f32.xlu1 %v353_v17 }
 0x245   :  { %360 = vmax.xlane.f32.xlu0 %v354_v20 }
 0x249   :  { %362 = vmax.xlane.f32.xlu0 %v355_v22 }
 0x2ce   :  { %v357_v23 = vpop.xlane.xlu0 %356 }
 0x2cf   :  { %v364_v24 = vsub.f32 %v352_v15, %v357_v23 }
 0x2d0   :  { %v359_v25 = vpop.xlane.xlu1 %358 }
 0x2d1   :  { %v368_v26 = vmul.f32 1.442695, %v364_v24  ;;  %v365_v27 = vsub.f32 %v353_v17, %v359_v25 }
 0x2d2   :  { %v361_v28 = vpop.xlane.xlu0 %360 }
 0x2d3   :  { %512 = vpow2.f32 %v368_v26  ;;  %v370_v29 = vmul.f32 1.442695, %v365_v27  ;;  %v366_v30 = vsub.f32 %v354_v20, %v361_v28 }
 0x2d5   :  { %514 = vpow2.f32 %v370_v29  ;;  %v372_v31 = vmul.f32 1.442695, %v366_v30 }
 0x2d6   :  { %v363_v32 = vpop.xlane.xlu0 %362 }
 0x2d7   :  { %516 = vpow2.f32 %v372_v31  ;;  %v367_v33 = vsub.f32 %v355_v22, %v363_v32 }
 0x2d9   :  { %v374_v34 = vmul.f32 1.442695, %v367_v33 }
 0x2db   :  { %518 = vpow2.f32 %v374_v34 }
 0x2dd   :  { %v513_v35 = vpop.eup %512 }
 0x2de   :  { %376 = vadd.xlane.f32.xlu1 %v513_v35 }
 0x2df   :  { %v515_v36 = vpop.eup %514 }
 0x2e0   :  { %378 = vadd.xlane.f32.xlu0 %v515_v36 }
 0x2e1   :  { %v517_v37 = vpop.eup %516 }
 0x2e2   :  { %380 = vadd.xlane.f32.xlu1 %v517_v37 }
 0x2e5   :  { %v519_v38 = vpop.eup %518 }
 0x2e6   :  { %382 = vadd.xlane.f32.xlu0 %v519_v38 }
 0x36b   :  { %v377_v39 = vpop.xlane.xlu1 %376 }
 0x36c   :  { %520 = vlog2.f32 %v377_v39 }
 0x36d   :  { %v379_v40 = vpop.xlane.xlu0 %378 }
 0x36e   :  { %522 = vlog2.f32 %v379_v40 }
 0x36f   :  { %v381_v41 = vpop.xlane.xlu1 %380 }
 0x370   :  { %524 = vlog2.f32 %v381_v41 }
 0x373   :  { %v383_v42 = vpop.xlane.xlu0 %382 }
 0x374   :  { %526 = vlog2.f32 %v383_v42 }
 0x376   :  { %v521_v43 = vpop.eup %520 }
 0x377   :  { %v385_v44 = vmul.f32 0.6931472, %v521_v43 }
 0x378   :  { %v523_v45 = vpop.eup %522 }
 0x379   :  { %v392_v46 = vsub.f32 %v364_v24, %v385_v44  ;;  %v387_v47 = vmul.f32 0.6931472, %v523_v45 }
 0x37a   :  { %v525_v50 = vpop.eup %524 }
 0x37b   :  { %v396_v48 = vmul.f32 1.442695, %v392_v46  ;;  %v393_v49 = vsub.f32 %v365_v27, %v387_v47  ;;  %v389_v53 = vmul.f32 0.6931472, %v525_v50 }
 0x37d   :  { %528 = vpow2.f32 %v396_v48  ;;  %v398_v51 = vmul.f32 1.442695, %v393_v49  ;;  %v394_v55 = vsub.f32 %v366_v30, %v389_v53 }
 0x37e   :  { %v527_v52 = vpop.eup %526 }
 0x37f   :  { %530 = vpow2.f32 %v398_v51  ;;  %v391_v54 = vmul.f32 0.6931472, %v527_v52  ;;  %v400_v58 = vsub.f32 %v392_v46, %v394_v55 }
 0x381   :  { %v395_v56 = vsub.f32 %v367_v33, %v391_v54 }
 0x383   :  { %v401_v59 = vsub.f32 %v393_v49, %v395_v56 }
 0x387   :  { %v529_v57 = vpop.eup %528 }
 0x388   :  { %v402_v61 = vmul.f32 %v529_v57, %v400_v58 }
 0x389   :  { %v531_v60 = vpop.eup %530 }
 0x38a   :  { %v403_v62 = vmul.f32 %v531_v60, %v401_v59 }
 0x38c   :  { %v404_v63 = vadd.f32 %v403_v62, %v402_v61 }
 0x38e   :  { %405 = vadd.xlane.f32.xlu1 %v404_v63 }
 0x41b   :  { %v406_v0 = vpop.xlane.xlu1 %405 }
 0x41c   :  { %v407_v1 = vrot.slane %v406_v0, 4 }
 0x41e   :  { %v408_v2 = vadd.f32 %v407_v1, %v406_v0 }
 0x420   :  { %v409_v3 = vrot.slane %v408_v2, 2 }
 0x422   :  { %v410_v4 = vadd.f32 %v409_v3, %v408_v2 }
 0x424   :  { %v411_v5 = vrot.slane %v410_v4, 1 }
 0x426   :  { %v412_v6 = vadd.f32 %v411_v5, %v410_v4 }
 0x428   :  { %495 = vpush %v412_v6 }
 0x459   :  { %s496_s6 = spop %495 }
 0x45a   :  { %s414_s21 = smul.f32 0.5, %s496_s6 }
 0x45c   :  { %416 = sst [smem:[#allocation2]] %s414_s21 }
 0x45d   :  { %541 = shalt.err (!%p538_p2)
}
 0x45e   :  { %s546_s28 = smov [#allocation2]  }
 0x45f   :  { %424 = dma.smem_to_hbm %s546_s28, 16, %s681_s7, [#allocation3]  }
 0x460   :  { %542 = dma.done.wait [#allocation3], 16  }
 0x461   :  { %543 = vsyncadd [#allocation3], 4294967280 }
 0x462   :  { %428 = sfence }
 0x463   :  { %429 = vsyncpa [#allocation3], 1 }

</bundles_post_ra>
